<compile_context>
chip_gen: v7x
topology: tpu7x:2x2x1
jax: 0.10.0
libtpu: 0.0.40
codegen_flags: <defaults>
</compile_context>

<pallas_src>
import math
import functools

import jax
import jax.numpy as jnp
from jax import lax
from jax.experimental import pallas as pl
from jax.experimental.pallas import tpu as pltpu


def _attention_group_kernel(x_ref, w_ref, b_ref, mask_ref,      # inputs
                            out_ref, scores_ref,                 # outputs
                            *, heads_per_step: int, head_size: int, compute_dtype):
    gw = heads_per_step * head_size

    # Fused projection for this head group only (weight columns pre-permuted in the
    # wrapper to [Q_grp | K_grp | V_grp]); single MXU matmul, f32 accumulation.
    x = x_ref[0]                                                  # (S, H) compute_dtype
    qkv = jnp.dot(x, w_ref[...], preferred_element_type=jnp.float32)
    qkv = (qkv + b_ref[...]).astype(compute_dtype)                # (S, 3*gw)

    mask = mask_ref[0, 0]                                         # (1, S) additive mask

    outs = []
    for i in range(heads_per_step):                               # static, small unroll
        lo = i * head_size
        q_i = qkv[:, lo:lo + head_size]                           # (S, d)
        k_i = qkv[:, gw + lo:gw + lo + head_size]                 # (S, d)
        v_i = qkv[:, 2 * gw + lo:2 * gw + lo + head_size]         # (S, d)

        # scores = (Q/sqrt(d)) @ K.T + mask  (scale folded into W_q/b_q in wrapper).
        s = lax.dot_general(q_i, k_i, (((1,), (1,)), ((), ())),
                            preferred_element_type=jnp.float32)   # (S, S) f32
        s = s + mask
        scores_ref[0, i] = s.astype(scores_ref.dtype)             # pre-softmax scores

        # Numerically-stable softmax; reciprocal on the (otherwise idle) EUP slot.
        m = jnp.max(s, axis=-1, keepdims=True)
        e = jnp.exp(s - m)
        p = e * pl.reciprocal(jnp.sum(e, axis=-1, keepdims=True), approx=True)

        # dropout (eval) and act_quanter are identity here.
        outs.append(jnp.dot(p.astype(compute_dtype), v_i,
                            preferred_element_type=jnp.float32))  # (S, d) f32

    out = outs[0] if heads_per_step == 1 else jnp.concatenate(outs, axis=-1)
    out_ref[0] = out.astype(out_ref.dtype)                        # (S, gw) lane-dense store


def _choose_heads_per_step(num_heads: int, head_size: int) -> int:
    # Smallest head group whose lane width (g*d) is 128-aligned; otherwise run all
    # heads in a single step so every block spans its full dim (always legal).
    for g in range(1, num_heads):
        if num_heads % g == 0 and (g * head_size) % 128 == 0:
            return g
    return num_heads


def bert_self_attention(hidden_states, wq, wk, wv, bq, bk, bv, attention_mask=None,
                        *, num_heads: int,
                        compute_dtype=jnp.bfloat16,
                        scores_dtype=jnp.bfloat16,      # bf16 halves the dominant HBM writeback
                        result_dtype=jnp.float32):
    """hidden_states: (B, S, H); w*: (H, H) PyTorch layout; b*: (H,); mask: (B, 1, 1, S)."""
    B, S, H = hidden_states.shape
    d = H // num_heads
    g = _choose_heads_per_step(num_heads, d)
    n_groups = num_heads // g
    gw = g * d
    inv_sqrt_d = 1.0 / math.sqrt(d)

    # One-time XLA prep OUTSIDE the kernel:
    #   * fold 1/sqrt(d) into the query weight/bias,
    #   * transpose to (H_in, H_out) so the kernel computes x @ W,
    #   * permute columns so group p's [Q|K|V] columns are contiguous,
    #   * cast MXU operands to bf16.
    wq_t = (wq * inv_sqrt_d).T.reshape(H, n_groups, gw)
    wk_t = wk.T.reshape(H, n_groups, gw)
    wv_t = wv.T.reshape(H, n_groups, gw)
    w_qkv = jnp.concatenate([wq_t, wk_t, wv_t], axis=-1)          # (H, n_groups, 3*gw)
    w_qkv = w_qkv.reshape(H, n_groups * 3 * gw).astype(compute_dtype)

    bq_s = (bq * inv_sqrt_d).reshape(n_groups, gw)
    bk_s = bk.reshape(n_groups, gw)
    bv_s = bv.reshape(n_groups, gw)
    b_qkv = jnp.concatenate([bq_s, bk_s, bv_s], axis=-1)          # (n_groups, 3*gw)
    b_qkv = b_qkv.reshape(1, n_groups * 3 * gw).astype(jnp.float32)

    x = hidden_states.astype(compute_dtype)
    if attention_mask is None:
        attention_mask = jnp.zeros((B, 1, 1, S), jnp.float32)
    mask = attention_mask.astype(jnp.float32)

    kernel = functools.partial(_attention_group_kernel,
                               heads_per_step=g, head_size=d,
                               compute_dtype=compute_dtype)

    grid_spec = pltpu.PrefetchScalarGridSpec(
        num_scalar_prefetch=0,
        grid=(B, n_groups),
        in_specs=[
            pl.BlockSpec((1, S, H), lambda b, p: (b, 0, 0)),          # x (resident across groups)
            pl.BlockSpec((H, 3 * gw), lambda b, p: (0, p)),           # per-group fused weight
            pl.BlockSpec((1, 3 * gw), lambda b, p: (0, p)),           # per-group fused bias
            pl.BlockSpec((1, 1, 1, S), lambda b, p: (b, 0, 0, 0)),    # additive attention mask
        ],
        out_specs=[
            pl.BlockSpec((1, S, gw), lambda b, p: (b, 0, p)),         # result slice (lane-dense)
            pl.BlockSpec((1, g, S, S), lambda b, p: (b, p, 0, 0)),    # per-group pre-softmax scores
        ],
    )

    result, scores = pl.pallas_call(
        kernel,
        out_shape=(
            jax.ShapeDtypeStruct((B, S, H), result_dtype),
            jax.ShapeDtypeStruct((B, num_heads, S, S), scores_dtype),
        ),
        grid_spec=grid_spec,
        compiler_params=pltpu.CompilerParams(
            dimension_semantics=("parallel", "parallel"),   # no cross-step coupling remains
            vmem_limit_bytes=48 * 1024 * 1024,
        ),
    )(x, w_qkv, b_qkv, mask)
    return result, scores


def _reference(hidden_states, wq, wk, wv, bq, bk, bv, attention_mask, num_heads):
    B, S, H = hidden_states.shape
    d = H // num_heads
    q = hidden_states @ wq.T + bq
    k = hidden_states @ wk.T + bk
    v = hidden_states @ wv.T + bv
    q = q.reshape(B, S, num_heads, d).transpose(0, 2, 1, 3)
    k = k.reshape(B, S, num_heads, d).transpose(0, 2, 1, 3)
    v = v.reshape(B, S, num_heads, d).transpose(0, 2, 1, 3)
    scores = jnp.einsum("bhqd,bhkd->bhqk", q, k) / math.sqrt(d)
    scores = scores + attention_mask
    probs = jax.nn.softmax(scores, axis=-1)
    out = jnp.einsum("bhqk,bhkd->bhqd", probs, v)
    out = out.transpose(0, 2, 1, 3).reshape(B, S, H)
    return out, scores


if __name__ == "__main__":
    # Small config: batch=2, seq=8, hidden=256, num_heads=4, head_size=64
    # (head_size=64 exercises the 128-lane head-pair path used at BERT-base sizes).
    B, S, H, NH = 2, 8, 256, 4

    key = jax.random.PRNGKey(0)
    k_x, k_wq, k_wk, k_wv, k_bq, k_bk, k_bv, k_m = jax.random.split(key, 8)

    hidden_states = jax.random.normal(k_x, (B, S, H), dtype=jnp.float32)
    scale = 1.0 / math.sqrt(H)
    wq = jax.random.normal(k_wq, (H, H), dtype=jnp.float32) * scale
    wk = jax.random.normal(k_wk, (H, H), dtype=jnp.float32) * scale
    wv = jax.random.normal(k_wv, (H, H), dtype=jnp.float32) * scale
    bq = jax.random.normal(k_bq, (H,), dtype=jnp.float32) * 0.02
    bk = jax.random.normal(k_bk, (H,), dtype=jnp.float32) * 0.02
    bv = jax.random.normal(k_bv, (H,), dtype=jnp.float32) * 0.02

    # BERT-style additive mask: 0 for kept positions, -10000 for masked ones.
    keep = (jax.random.uniform(k_m, (B, S)) > 0.2).astype(jnp.float32)
    attention_mask = ((1.0 - keep) * -10000.0).reshape(B, 1, 1, S)

    result, attn_scores = bert_self_attention(
        hidden_states, wq, wk, wv, bq, bk, bv, attention_mask, num_heads=NH)
    jax.block_until_ready((result, attn_scores))

    ref_result, ref_scores = _reference(
        hidden_states, wq, wk, wv, bq, bk, bv, attention_mask, NH)

    assert result.shape == (B, S, H)
    assert attn_scores.shape == (B, NH, S, S)
    # Tolerance loosened vs. the pure-f32 reference: bf16 MXU operands (f32 accumulation),
    # bf16 scores output, and the approx EUP reciprocal in softmax.
    assert jnp.allclose(result.astype(jnp.float32), ref_result, atol=1.5e-1, rtol=5e-2)
    assert jnp.allclose(attn_scores.astype(jnp.float32), ref_scores, atol=1.5e-1, rtol=5e-2)

    print("KERNEL_OK")
</pallas_src>

<mosaic_0001>
module attributes {stable_mosaic.version = 11 : i64} {
  func.func @_attention_group_kernel(%arg0: i32, %arg1: i32, %arg2: memref<1x8x256xbf16, #tpu.memory_space<vmem>>, %arg3: memref<256x384xbf16, #tpu.memory_space<vmem>>, %arg4: memref<1x384xf32, #tpu.memory_space<vmem>>, %arg5: memref<1x1x1x8xf32, #tpu.memory_space<vmem>>, %arg6: memref<1x8x128xf32, #tpu.memory_space<vmem>>, %arg7: memref<1x2x8x8xbf16, #tpu.memory_space<vmem>>) attributes {dimension_semantics = [#tpu.dimension_semantics<parallel>, #tpu.dimension_semantics<parallel>], iteration_bounds = array<i64: 2, 2>, scalar_prefetch = 0 : i64, scratch_operands = 0 : i64, tpu.core_type = #tpu.core_type<tc>, window_params = [{transform_indices = @transform_0, window_bounds = array<i64: 1, 8, 256>}, {transform_indices = @transform_1, window_bounds = array<i64: 256, 384>}, {transform_indices = @transform_2, window_bounds = array<i64: 1, 384>}, {transform_indices = @transform_3, window_bounds = array<i64: 1, 1, 1, 8>}, {transform_indices = @transform_4, window_bounds = array<i64: 1, 8, 128>}, {transform_indices = @transform_5, window_bounds = array<i64: 1, 2, 8, 8>}]} {
    %c0 = arith.constant 0 : index
    %c0_0 = arith.constant 0 : index
    %c0_1 = arith.constant 0 : index
    %0 = vector.load %arg2[%c0, %c0_0, %c0_1] : memref<1x8x256xbf16, #tpu.memory_space<vmem>>, vector<1x8x256xbf16>
    %1 = vector.shape_cast %0 : vector<1x8x256xbf16> to vector<8x256xbf16>
    %c0_2 = arith.constant 0 : index
    %c0_3 = arith.constant 0 : index
    %2 = vector.load %arg3[%c0_2, %c0_3] : memref<256x384xbf16, #tpu.memory_space<vmem>>, vector<256x384xbf16>
    %cst = arith.constant dense<0.000000e+00> : vector<8x384xf32>
    %3 = tpu.matmul %1, %2, %cst {dimension_numbers = #tpu.dot_dimension_numbers<[1], [0], [0], [1], [0, 0, 1, 1], [], []>} : vector<8x256xbf16>, vector<256x384xbf16>, vector<8x384xf32> -> vector<8x384xf32>
    %c0_4 = arith.constant 0 : index
    %c0_5 = arith.constant 0 : index
    %4 = vector.load %arg4[%c0_4, %c0_5] : memref<1x384xf32, #tpu.memory_space<vmem>>, vector<1x384xf32>
    %5 = vector.broadcast %4 : vector<1x384xf32> to vector<8x384xf32>
    %6 = arith.addf %3, %5 : vector<8x384xf32>
    %7 = arith.truncf %6 : vector<8x384xf32> to vector<8x384xbf16>
    %c0_6 = arith.constant 0 : index
    %c0_7 = arith.constant 0 : index
    %c0_8 = arith.constant 0 : index
    %c0_9 = arith.constant 0 : index
    %8 = vector.load %arg5[%c0_6, %c0_7, %c0_8, %c0_9] : memref<1x1x1x8xf32, #tpu.memory_space<vmem>>, vector<1x1x1x8xf32>
    %9 = vector.shape_cast %8 : vector<1x1x1x8xf32> to vector<1x8xf32>
    %10 = vector.extract_strided_slice %7 {offsets = [0, 0], sizes = [8, 64], strides = [1, 1]} : vector<8x384xbf16> to vector<8x64xbf16>
    %11 = vector.extract_strided_slice %7 {offsets = [0, 128], sizes = [8, 64], strides = [1, 1]} : vector<8x384xbf16> to vector<8x64xbf16>
    %12 = vector.extract_strided_slice %7 {offsets = [0, 256], sizes = [8, 64], strides = [1, 1]} : vector<8x384xbf16> to vector<8x64xbf16>
    %cst_10 = arith.constant dense<0.000000e+00> : vector<8x8xf32>
    %13 = tpu.matmul %10, %11, %cst_10 {dimension_numbers = #tpu.dot_dimension_numbers<[1], [1], [0], [0], [0, 0, 1, 0], [], []>} : vector<8x64xbf16>, vector<8x64xbf16>, vector<8x8xf32> -> vector<8x8xf32>
    %14 = vector.broadcast %9 : vector<1x8xf32> to vector<8x8xf32>
    %15 = arith.addf %13, %14 : vector<8x8xf32>
    %16 = arith.truncf %15 : vector<8x8xf32> to vector<8x8xbf16>
    %c0_11 = arith.constant 0 : index
    %c0_12 = arith.constant 0 : index
    %c0_13 = arith.constant 0 : index
    %c0_14 = arith.constant 0 : index
    %17 = vector.load %arg7[%c0_11, %c0_12, %c0_13, %c0_14] : memref<1x2x8x8xbf16, #tpu.memory_space<vmem>>, vector<1x1x8x8xbf16>
    %18 = vector.shape_cast %17 : vector<1x1x8x8xbf16> to vector<8x8xbf16>
    %19 = vector.shape_cast %16 : vector<8x8xbf16> to vector<1x1x8x8xbf16>
    tpu.vector_store %arg7[%c0_11, %c0_12, %c0_13, %c0_14], %19 {strides = array<i32>} : memref<1x2x8x8xbf16, #tpu.memory_space<vmem>>, vector<1x1x8x8xbf16>,
    %cst_15 = arith.constant dense<0xFF800000> : vector<8xf32>
    %20 = vector.multi_reduction <maximumf>, %15, %cst_15 [1] : vector<8x8xf32> to vector<8xf32>
    %21 = vector.shape_cast %20 : vector<8xf32> to vector<8x1xf32>
    %22 = vector.broadcast %21 : vector<8x1xf32> to vector<8x8xf32>
    %23 = arith.subf %15, %22 : vector<8x8xf32>
    %24 = math.exp %23 : vector<8x8xf32>
    %cst_16 = arith.constant dense<0.000000e+00> : vector<8xf32>
    %25 = vector.multi_reduction <add>, %24, %cst_16 [1] : vector<8x8xf32> to vector<8xf32>
    %26 = vector.shape_cast %25 : vector<8xf32> to vector<8x1xf32>
    %27 = tpu.reciprocal %26 {approx = true} : vector<8x1xf32> -> vector<8x1xf32>
    %28 = vector.broadcast %27 : vector<8x1xf32> to vector<8x8xf32>
    %29 = arith.mulf %24, %28 : vector<8x8xf32>
    %30 = arith.truncf %29 : vector<8x8xf32> to vector<8x8xbf16>
    %cst_17 = arith.constant dense<0.000000e+00> : vector<8x64xf32>
    %31 = tpu.matmul %30, %12, %cst_17 {dimension_numbers = #tpu.dot_dimension_numbers<[1], [0], [0], [1], [0, 0, 1, 1], [], []>} : vector<8x8xbf16>, vector<8x64xbf16>, vector<8x64xf32> -> vector<8x64xf32>
    %32 = vector.extract_strided_slice %7 {offsets = [0, 64], sizes = [8, 64], strides = [1, 1]} : vector<8x384xbf16> to vector<8x64xbf16>
    %33 = vector.extract_strided_slice %7 {offsets = [0, 192], sizes = [8, 64], strides = [1, 1]} : vector<8x384xbf16> to vector<8x64xbf16>
    %34 = vector.extract_strided_slice %7 {offsets = [0, 320], sizes = [8, 64], strides = [1, 1]} : vector<8x384xbf16> to vector<8x64xbf16>
    %cst_18 = arith.constant dense<0.000000e+00> : vector<8x8xf32>
    %35 = tpu.matmul %32, %33, %cst_18 {dimension_numbers = #tpu.dot_dimension_numbers<[1], [1], [0], [0], [0, 0, 1, 0], [], []>} : vector<8x64xbf16>, vector<8x64xbf16>, vector<8x8xf32> -> vector<8x8xf32>
    %36 = vector.broadcast %9 : vector<1x8xf32> to vector<8x8xf32>
    %37 = arith.addf %35, %36 : vector<8x8xf32>
    %38 = arith.truncf %37 : vector<8x8xf32> to vector<8x8xbf16>
    %c0_19 = arith.constant 0 : index
    %c1 = arith.constant 1 : index
    %c0_20 = arith.constant 0 : index
    %c0_21 = arith.constant 0 : index
    %39 = vector.load %arg7[%c0_19, %c1, %c0_20, %c0_21] : memref<1x2x8x8xbf16, #tpu.memory_space<vmem>>, vector<1x1x8x8xbf16>
    %40 = vector.shape_cast %39 : vector<1x1x8x8xbf16> to vector<8x8xbf16>
    %41 = vector.shape_cast %38 : vector<8x8xbf16> to vector<1x1x8x8xbf16>
    tpu.vector_store %arg7[%c0_19, %c1, %c0_20, %c0_21], %41 {strides = array<i32>} : memref<1x2x8x8xbf16, #tpu.memory_space<vmem>>, vector<1x1x8x8xbf16>,
    %cst_22 = arith.constant dense<0xFF800000> : vector<8xf32>
    %42 = vector.multi_reduction <maximumf>, %37, %cst_22 [1] : vector<8x8xf32> to vector<8xf32>
    %43 = vector.shape_cast %42 : vector<8xf32> to vector<8x1xf32>
    %44 = vector.broadcast %43 : vector<8x1xf32> to vector<8x8xf32>
    %45 = arith.subf %37, %44 : vector<8x8xf32>
    %46 = math.exp %45 : vector<8x8xf32>
    %cst_23 = arith.constant dense<0.000000e+00> : vector<8xf32>
    %47 = vector.multi_reduction <add>, %46, %cst_23 [1] : vector<8x8xf32> to vector<8xf32>
    %48 = vector.shape_cast %47 : vector<8xf32> to vector<8x1xf32>
    %49 = tpu.reciprocal %48 {approx = true} : vector<8x1xf32> -> vector<8x1xf32>
    %50 = vector.broadcast %49 : vector<8x1xf32> to vector<8x8xf32>
    %51 = arith.mulf %46, %50 : vector<8x8xf32>
    %52 = arith.truncf %51 : vector<8x8xf32> to vector<8x8xbf16>
    %cst_24 = arith.constant dense<0.000000e+00> : vector<8x64xf32>
    %53 = tpu.matmul %52, %34, %cst_24 {dimension_numbers = #tpu.dot_dimension_numbers<[1], [0], [0], [1], [0, 0, 1, 1], [], []>} : vector<8x8xbf16>, vector<8x64xbf16>, vector<8x64xf32> -> vector<8x64xf32>
    %54 = tpu.concatenate %31, %53 in 1 : vector<8x64xf32>, vector<8x64xf32> -> vector<8x128xf32>
    %c0_25 = arith.constant 0 : index
    %c0_26 = arith.constant 0 : index
    %c0_27 = arith.constant 0 : index
    %55 = vector.load %arg6[%c0_25, %c0_26, %c0_27] : memref<1x8x128xf32, #tpu.memory_space<vmem>>, vector<1x8x128xf32>
    %56 = vector.shape_cast %55 : vector<1x8x128xf32> to vector<8x128xf32>
    %57 = vector.shape_cast %54 : vector<8x128xf32> to vector<1x8x128xf32>
    tpu.vector_store %arg6[%c0_25, %c0_26, %c0_27], %57 {strides = array<i32>} : memref<1x8x128xf32, #tpu.memory_space<vmem>>, vector<1x8x128xf32>,
    return
  }
  func.func @transform_0(%arg0: i32, %arg1: i32) -> (i32, i32, i32) {
    %c0_i32 = arith.constant 0 : i32
    %c0_i32_0 = arith.constant 0 : i32
    %c0_i32_1 = arith.constant 0 : i32
    return %arg0, %c0_i32, %c0_i32_0 : i32, i32, i32
  }
  func.func @transform_1(%arg0: i32, %arg1: i32) -> (i32, i32) {
    %c0_i32 = arith.constant 0 : i32
    %c0_i32_0 = arith.constant 0 : i32
    return %c0_i32, %arg1 : i32, i32
  }
  func.func @transform_2(%arg0: i32, %arg1: i32) -> (i32, i32) {
    %c0_i32 = arith.constant 0 : i32
    %c0_i32_0 = arith.constant 0 : i32
    return %c0_i32, %arg1 : i32, i32
  }
  func.func @transform_3(%arg0: i32, %arg1: i32) -> (i32, i32, i32, i32) {
    %c0_i32 = arith.constant 0 : i32
    %c0_i32_0 = arith.constant 0 : i32
    %c0_i32_1 = arith.constant 0 : i32
    %c0_i32_2 = arith.constant 0 : i32
    return %arg0, %c0_i32, %c0_i32_0, %c0_i32_1 : i32, i32, i32, i32
  }
  func.func @transform_4(%arg0: i32, %arg1: i32) -> (i32, i32, i32) {
    %c0_i32 = arith.constant 0 : i32
    %c0_i32_0 = arith.constant 0 : i32
    return %arg0, %c0_i32, %arg1 : i32, i32, i32
  }
  func.func @transform_5(%arg0: i32, %arg1: i32) -> (i32, i32, i32, i32) {
    %c0_i32 = arith.constant 0 : i32
    %c0_i32_0 = arith.constant 0 : i32
    %c0_i32_1 = arith.constant 0 : i32
    return %arg0, %arg1, %c0_i32, %c0_i32_0 : i32, i32, i32, i32
  }
}

</mosaic_0001>

<bundles_post_ra>
// kernel: tpu_custom_call.1
= control target key start
LH: loop header
LB: loop body
LE: loop exit
PB: predicated region body
PF: predicated region fallthrough
CT: control target
= control target key end

     0   :  { %s2335_s0 = inlined_call_operand.hbm [shape: bf16[2,8,256], index: 0, kind: input, shape index: {}]   ;;  %s2336_s1 = inlined_call_operand.hbm [shape: bf16[256,768], index: 1, kind: input, shape index: {}]   ;;  %s2337_s2 = inlined_call_operand.vmem [shape: f32[1,768], index: 2, kind: input, shape index: {}]   ;;  %s2338_s3 = inlined_call_operand.vmem [shape: f32[2,1,1,8], index: 3, kind: input, shape index: {}]   ;;  %s2339_s4 = inlined_call_operand.hbm [shape: f32[2,8,256], index: 4, kind: output, shape index: {0}]   ;;  %s2340_s5 = inlined_call_operand.hbm [shape: bf16[2,4,8,8], index: 5, kind: output, shape index: {1}]  }
   0x1   :  { %2351 = sst [smem:[#allocation22_spill]] %s2335_s0 }
   0x2   :  { %2352 = sst [smem:[#allocation23_spill]] %s2339_s4 }
   0x3   :  { %11 = vsyncpa [#allocation3], 0 }
   0x4   :  { %13 = vsyncpa [#allocation3 + $0x1], 0 }
   0x5   :  { %14 = vsyncpa [#allocation6], 0 }
   0x6   :  { %16 = vsyncpa [#allocation6 + $0x1], 0 }
   0x7   :  { %17 = vsyncpa [#allocation4], 0 }
   0x8   :  { %19 = vsyncpa [#allocation4 + $0x1], 0 }
   0x9   :  { %20 = vsyncpa [#allocation9], 0 }
   0xa   :  { %22 = vsyncpa [#allocation9 + $0x1], 0  ;;  %s1847_s18 = smov 0   ;;  %s1849_s19 = smov 0  }
   0xb   :  { %s1851_s20 = smov 0   ;;  %s1853_s21 = smov 0  }
   0xc   :  { %s1855_s22 = smov 0   ;;  %s1857_s23 = smov 0  }
   0xd   :  { %s1859_s24 = smov 0   ;;  %s1861_s25 = smov 0  }
   0xe   :  { %s1863_s26 = smov 0   ;;  %s1865_s27 = smov 0  }
   0xf   :  { %s1867_s28 = smov 0   ;;  %s1869_s29 = smov 0  }
  0x10   :  { %s1871_s30 = smov 0   ;;  %s1873_s6 = smov 0  }
  0x11 LB: > { %2353 = sst [smem:[#allocation14_spill]] %s1752_s18  ;;  %s2341_s7 = sadd.s32 4294967295, %s1804_s6   ;;  %s1804_s6 = sphi %s1873_s6, %s28_s6   ;;  %s1800_s30 = sphi %s1871_s30, %s2389_s30   ;;  %s1796_s29 = sphi %s1869_s29, %s2388_s29   ;;  %s1792_s28 = sphi %s1867_s28, %s2400_s28   ;;  %s1788_s27 = sphi %s1865_s27, %s2399_s27   ;;  %s1784_s26 = sphi %s1863_s26, %s2398_s26   ;;  %s1780_s25 = sphi %s1861_s25, %s2397_s25   ;;  %s1776_s24 = sphi %s1859_s24, %s2396_s24   ;;  %s1772_s23 = sphi %s1857_s23, %s2395_s23   ;;  %s1768_s22 = sphi %s1855_s22, %s2394_s22   ;;  %s1764_s21 = sphi %s1853_s21, %s2393_s21   ;;  %s1760_s20 = sphi %s1851_s20, %s2392_s20   ;;  %s1756_s19 = sphi %s1849_s19, %s2391_s19   ;;  %s1752_s18 = sphi %s1847_s18, %s2390_s18  }
  0x12   : > { %2354 = sst [smem:[#allocation15_spill]] %s1796_s29  ;;  %s37_s9 = sadd.s32 1, %s1796_s29 }
  0x13   : > { %2355 = sst [smem:[#allocation16_spill]] %s1800_s30  ;;  %s40_s10 = sadd.s32 1, %s1800_s30 }
  0x14   : > { %p38_p0 = scmp.ge.s32.totalorder %s37_s9, 2  ;;  %s47_s11 = sadd.s32 1, %s1784_s26 }
  0x15   : > { %p54_p1 = scmp.ne.s32.totalorder %s1784_s26, %s1780_s25  ;;  %p55_p2 = scmp.eq.s32.totalorder %s1804_s6, 0 }
  0x16   : > { %s2402_s9 = smov (%p38_p0, %s37_s9), 0  ;;  %s2404_s10 = smov (!%p38_p0, %s40_s10), %s1800_s30 }
  0x17   : > { %2356 = sst [smem:[#allocation17_spill]] %s2402_s9  ;;  %p1928_p3 = por %p55_p2, %p54_p1 }
  0x18   : > { %p60_p4 = scmp.ne.s32.totalorder %s1780_s25, %s1776_s24  ;;  %p42_p5 = scmp.ge.s32.totalorder %s2404_s10, 2 }
  0x19   : > { %p1935_p6 = scmp.eq.s32.totalorder %s2341_s7, 0  ;;  %s70_s14 = ssub.s32 %s1796_s29, %s2402_s9 }
  0x1a   : > { %s73_s15 = sadd.s32 1, %s1772_s23  ;;  %s2406_s10 = smov (%p42_p5, %s2404_s10), 0 }
  0x1b   : > { %2359 = sst [smem:[#allocation18_spill]] %s2406_s10  ;;  %p1946_p7 = por %p1935_p6, %p60_p4 }
  0x1c   : > { %p71_p8 = scmp.eq.s32.totalorder %s70_s14, 0  ;;  %s44_s17 = ssub.s32 %s1800_s30, %s2406_s10 }
  0x1d   : > { %s2360_s16 = scalar_select %p1946_p7, 1, 0 }
  0x1e   : > { %p80_p9 = scmp.ne.s32.totalorder %s1772_s23, %s1768_s22  ;;  %p45_p10 = scmp.eq.s32.totalorder %s44_s17, 0 }
  0x1f   : > { %p86_p11 = scmp.ne.s32.totalorder %s1768_s22, %s1764_s21  ;;  %s150_s10 = sor.u32 %s70_s14, %s44_s17 }
  0x20   : > { %s1957_s24 = scalar_select %p71_p8, %s1772_s23, %s73_s15  }
  0x21   : > { %s1960_s8 = scalar_select %p45_p10, %s1784_s26, %s47_s11  }
  0x22   : > { %2361 = sst [smem:[#allocation19_spill]] %s1957_s24  ;;  %p1964_p12 = por %p80_p9, %p55_p2 }
  0x23   : > { %2362 = sst [smem:[#allocation20_spill]] %s1960_s8  ;;  %p1970_p13 = por %p86_p11, %p1935_p6 }
  0x24   : > { %s153_s4 = sadd.s32 1, %s1760_s20  ;;  %p151_p0 = scmp.eq.s32.totalorder %s150_s10, 0 }
  0x25   : > { %s2364_s9 = scalar_select %p1970_p13, 1, 0 }
  0x26   : > { %p163_p1 = scmp.ne.s32.totalorder %s1760_s20, %s1756_s19  ;;  %s2365_s21 = sadd.s32 4294967295, %s1804_s6  }
  0x27   : > { %p164_p4 = scmp.eq.s32.totalorder %s2365_s21, 3  ;;  %p169_p5 = scmp.ne.s32.totalorder %s1756_s19, %s1752_s18 }
  0x28   : > { %s1982_s11 = scalar_select %p151_p0, %s1760_s20, %s153_s4  }
  0x29   : > { %p1984_p2 = por %p164_p4, %p163_p1  ;;  %s2368_s13 = sadd.s32 4294967294, %s1804_s6  }
  0x2a   : > { %2366 = sst [smem:[#allocation21_spill]] %s1982_s11  ;;  %p170_p6 = scmp.eq.s32.totalorder %s2368_s13, 3 }
  0x2b   : > { %s2367_s15 = scalar_select %p1984_p2, 1, 0 }
  0x2c   : > { %p1367_p8 = scmp.lt.s32.totalorder %s1804_s6, 4  ;;  %p1991_p9 = por %p170_p6, %p169_p5 }
  0x2d   : > { %s218_s10 = sand.u32 1, %s1784_s26   ;;  %s1287_s8 = sshll.u32 %s1800_s30, 7 }
  0x2e   : > { %s2369_s14 = scalar_select %p1991_p9, 1, 0 }
  0x2f   : > { %s1214_s17 = sshll.u32 %s218_s10, 3  ;;  %s2370_s0 = sld [smem:[#allocation22_spill]] }
  0x30   : > { %s222_s4 = scalar_lea.vmem [#allocation2], %s1214_s17  ;;  %p2006_p10 = pnand %p1367_p8, %p1928_p3 }
  0x31   : > { %s230_s11 = sshll.u32 %s222_s4, 4  ;;  %p2012_p11 = pnand %p1367_p8, %p1964_p12  ;;  %s2002_s11 = int_to_ptr.vmem [resolvable:$true] %s230_s11 }
  0x32   : > { %p1564_p5 = pneg %p2006_p10 }
  0x35   : > { %s2000_s18 = scalar_lea.hbm %s2370_s0, %s1287_s8  ;;  %s219_s8 = scalar_lea.sflag [#allocation3], %s218_s10 }
  0x36   : > { %s1562_s17 = scalar_lea.hbm %s2000_s18, 128  ;;  %s1567_s7 = scalar_lea.hbm %s2370_s0, 256 }
  0x37   : > { %p1563_p4 = scmp.ne.s32.totalorder %s2000_s18, %s1562_s17  ;;  %p1568_p12 = scmp.lt.u32.totalorder %s2000_s18, %s2370_s0 }
  0x38   : > { %p1569_p8 = scmp.lt.u32.totalorder %s1567_s7, %s1562_s17  ;;  %p1571_p1 = scmp.lt.u32.totalorder %s1562_s17, %s2000_s18 }
  0x39   : > { %p1565_p3 = pnand %p1564_p5, %p1563_p4 }
  0x3a   : > { %p1570_p0 = por %p1569_p8, %p1568_p12 }
  0x3b   : > { %p1566_p6 = pneg %p1565_p3 }
  0x3c   : > { %p1572_p9 = por %p1571_p1, %p1570_p0 }
  0x3e   : > { %p1573_p2 = pnand %p1572_p9, %p1566_p6 }
  0x40   : > { %1576 = shalt.err (!%p1573_p2)
}
  0x41   : > { %s1577_s10 = scalar_lea.vmem %s2002_s11, 128  ;;  %s1806_s12 = smov [#allocation2]  }
  0x42   : > { %p1578_p4 = scmp.ne.s32.totalorder %s2002_s11, %s1577_s10  ;;  %s1582_s21 = sshll.u32 %s1806_s12, 4  ;;  %s1583_s21 = int_to_ptr.vmem [resolvable:$false] %s1582_s21 }
  0x43   : > { %s1584_s30 = scalar_lea.vmem %s1583_s21, 256  ;;  %p1585_p7 = scmp.lt.s32.totalorder %s2002_s11, %s1583_s21 }
  0x44   : > { %p1580_p3 = pnand %p1578_p4, %p1564_p5  ;;  %p1586_p12 = scmp.lt.s32.totalorder %s1584_s30, %s1577_s10 }
  0x46   : > { %p1581_p13 = pneg %p1580_p3  ;;  %p1587_p8 = por %p1586_p12, %p1585_p7 }
  0x48   : > { %p1588_p0 = pnand %p1587_p8, %p1581_p13 }
  0x4a   : > { %1591 = shalt.err (!%p1588_p0)
}
  0x4b   : > { %1356 = dma.hbm_to_vmem [thread:$0]  (!%p2006_p10), %s2000_s18, 128, %s2002_s11, %s219_s8  }
  0x4c   : > { %p2373_p2 = scmp.lt.s32.totalorder %s1804_s6, 5  ;;  %p2374_p9 = scmp.ge.s32.totalorder %s1804_s6, 1 }
  0x4d   : > { %s237_s7 = sand.u32 1, %s1772_s23   ;;  %s1288_s4 = smul.u32 192, %s1796_s29 }
  0x4e   : > { %p2047_p1 = pnand %p2374_p9, %p2373_p2  ;;  %s1343_s10 = smul.u32 384, %s237_s7 }
  0x4f   : > { %s2056_s21 = scalar_lea.hbm %s2336_s1, %s1288_s4  ;;  %s2060_s11 = scalar_lea.sflag [#allocation6], %s237_s7 }
  0x50   : > { %s241_s30 = scalar_lea.vmem [#allocation5], %s1343_s10  ;;  %s1592_s8 = scalar_lea.hbm %s2056_s21, 6144 }
  0x51   : > { %s248_s18 = sshll.u32 %s241_s30, 4  ;;  %p1593_p7 = scmp.ne.s32.totalorder %s2056_s21, %s1592_s8  ;;  %s2058_s18 = int_to_ptr.vmem [resolvable:$true] %s248_s18 }
  0x52   : > { %p1594_p13 = pneg %p2012_p11  ;;  %s1597_s13 = scalar_lea.hbm %s2336_s1, 12288 }
  0x53   : > { %p1598_p6 = scmp.lt.u32.totalorder %s2056_s21, %s2336_s1  ;;  %p1599_p4 = scmp.lt.u32.totalorder %s1597_s13, %s1592_s8 }
  0x54   : > { %p1595_p10 = pnand %p1594_p13, %p1593_p7  ;;  %p1601_p12 = scmp.lt.u32.totalorder %s1592_s8, %s2056_s21 }
  0x55   : > { %p1600_p3 = por %p1599_p4, %p1598_p6 }
  0x56   : > { %p1596_p5 = pneg %p1595_p10 }
  0x57   : > { %p1602_p8 = por %p1601_p12, %p1600_p3 }
  0x59   : > { %p1603_p0 = pnand %p1602_p8, %p1596_p5 }
  0x5b   : > { %1606 = shalt.err (!%p1603_p0)
}
  0x5c   : > { %s1607_s7 = scalar_lea.vmem %s2058_s18, 6144  ;;  %s1807_s10 = smov [#allocation5]  }
  0x5d   : > { %p1608_p2 = scmp.ne.s32.totalorder %s2058_s18, %s1607_s7  ;;  %s1612_s30 = sshll.u32 %s1807_s10, 4  ;;  %s1613_s30 = int_to_ptr.vmem [resolvable:$false] %s1612_s30 }
  0x5e   : > { %s1614_s0 = scalar_lea.vmem %s1613_s30, 12288  ;;  %p1615_p10 = scmp.lt.s32.totalorder %s2058_s18, %s1613_s30 }
  0x5f   : > { %p1610_p9 = pnand %p1608_p2, %p1594_p13  ;;  %p1616_p6 = scmp.lt.s32.totalorder %s1614_s0, %s1607_s7 }
  0x61   : > { %p1611_p7 = pneg %p1610_p9  ;;  %p1617_p4 = por %p1616_p6, %p1615_p10 }
  0x63   : > { %p1618_p3 = pnand %p1617_p4, %p1611_p7 }
  0x65   : > { %1621 = shalt.err (!%p1618_p3)
}
  0x66   : > { %s1808_s29 = smov 384   ;;  %s1809_s8 = smov 192  }
  0x67   : > { %s1810_s4 = smov 12   ;;  %274 = sbr.rel (%p2047_p1) target bundleno = 1816 (0x718), region = 36 }
  0x68   : > { %1359 = dma.hbm_to_vmem [thread:$0]  (!%p2012_p11), %s2056_s21, 6144, %s2058_s18, %s2060_s11, %s1808_s29, %s1809_s8, %s1810_s4  }
  0x69   : > { %s276_s12 = sand.u32 (!%p2047_p1), 1, %s1780_s25   ;;  %p2376_p13 = scmp.ne.s32.totalorder (!%p2047_p1), %s2360_s16, 0 }
  0x6a   : > { %s2091_s13 = sshll.u32 (!%p2047_p1), %s276_s12, 3  ;;  %s277_s7 = scalar_lea.sflag (!%p2047_p1), [#allocation3], %s276_s12 }
  0x6b   : > { %s280_s10 = scalar_lea.vmem (!%p2047_p1), [#allocation2], %s2091_s13 }
  0x6e   : > { %1735 = dma.done.wait (%p2376_p13), %s277_s7, 128  }
  0x6f   : > { %1737 = vsyncadd (%p2376_p13), %s277_s7, 4294967168  ;;  %s285_s24 = sand.u32 1, %s1768_s22   ;;  %p2377_p11 = scmp.ne.s32.totalorder %s2364_s9, 0 }
  0x70   : > { %s1344_s21 = smul.u32 384, %s285_s24  ;;  %s286_s18 = scalar_lea.sflag [#allocation6], %s285_s24 }
  0x72   : > { %s2099_s17 = scalar_lea.vmem [#allocation5], %s1344_s21 }
  0x73   : > { %1739 = dma.done.wait (%p2377_p11), %s286_s18, 6144  }
  0x74   : > { %1741 = vsyncadd (%p2377_p11), %s286_s18, 4294961152  ;;  %v1488_v0 = vld [vmem:[%s2099_s17 + $0x4] ss:$12 sps:$4 sm:$0xff]   ;;  %v1490_v1 = vld [vmem:[%s2099_s17] ss:$12 sps:$4 sm:$0xff]   ;;  %v1811_v51 = vmov 0.0   ;;  %v411_v52 = vlaneseq }
  0x75   : > { %689 = vmatprep.subr.bf16.mxu0 %v1488_v0  ;;  %v1491_v2 = vld [vmem:[%s2099_s17 + $0x1c] ss:$12 sps:$4 sm:$0xff]   ;;  %v1493_v3 = vld [vmem:[%s2099_s17 + $0x18] ss:$12 sps:$4 sm:$0xff]   ;;  %v1494_v4 = vld [vmem:[%s2099_s17 + $0x34] ss:$12 sps:$4 sm:$0xff]  }
  0x76   : > { %690 = vmatpush1.bf16.msra.mxu0 %v1490_v1  ;;  %v1496_v5 = vld [vmem:[%s2099_s17 + $0x30] ss:$12 sps:$4 sm:$0xff]   ;;  %v1497_v6 = vld [vmem:[%s2099_s17 + $0x4c] ss:$12 sps:$4 sm:$0xff]   ;;  %v1499_v7 = vld [vmem:[%s2099_s17 + $0x48] ss:$12 sps:$4 sm:$0xff]  }
  0x77   : > { %691 = vmatprep.subr.bf16.mxu0 %v1491_v2  ;;  %v1500_v8 = vld [vmem:[%s2099_s17 + $0x64] ss:$12 sps:$4 sm:$0xff]   ;;  %v1502_v9 = vld [vmem:[%s2099_s17 + $0x60] ss:$12 sps:$4 sm:$0xff]   ;;  %v1503_v10 = vld [vmem:[%s2099_s17 + $0x7c] ss:$12 sps:$4 sm:$0xff]  }
  0x78   : > { %v1505_v11 = vld [vmem:[%s2099_s17 + $0x78] ss:$12 sps:$4 sm:$0xff]   ;;  %v1506_v12 = vld [vmem:[%s2099_s17 + $0x94] ss:$12 sps:$4 sm:$0xff]   ;;  %v1508_v13 = vld [vmem:[%s2099_s17 + $0x90] ss:$12 sps:$4 sm:$0xff]  }
  0x79   : > { %v2121_v14 = vld [vmem:[%s280_s10] sm:$0xff]  ;;  %v1540_v19 = vld [vmem:[%s2099_s17 + $0xe0] ss:$12 sps:$4 sm:$0xff]   ;;  %vm1812_vm0 = vmmov 0   ;;  %s334_s9 = smul.u32 3, %s1788_s27  ;;  %v412_v53 = vshrl.u32 %v411_v52, 7 }
  0x7a   : > { %692 = vmatpush1.bf16.msra.mxu0 %v1493_v3  ;;  %v1509_v15 = vld [vmem:[%s2099_s17 + $0xac] ss:$12 sps:$4 sm:$0xff]   ;;  %v1223_v16 = vcombine.high %v2121_v14, %v2121_v14  ;;  %v1538_v17 = vld [vmem:[%s2099_s17 + $0xc8] ss:$12 sps:$4 sm:$0xff]   ;;  %v1512_v23 = vld [vmem:[%s2099_s17 + $0xc4] ss:$12 sps:$4 sm:$0xff]   ;;  %v1222_v48 = vcombine.low %v2121_v14, %v2121_v14 }
  0x7b   : > { %693 = vmatprep.subr.bf16.mxu0 %v1494_v4  ;;  %v1539_v18 = vld [vmem:[%s2099_s17 + $0x8] ss:$12 sps:$4 sm:$0xff]   ;;  %1289 = vmatprep.subr.bf16.mxu1 %v1538_v17  ;;  %v1541_v21 = vld [vmem:[%s2099_s17 + $0x20] ss:$12 sps:$4 sm:$0xff]   ;;  %v1542_v22 = vld [vmem:[%s2099_s17 + $0xf8] ss:$12 sps:$4 sm:$0xff]  }
  0x7c   : > { %721 = vmatprep.mubr.bf16.mxu0 %v1223_v16  ;;  %v1511_v20 = vld [vmem:[%s2099_s17 + $0xa8] ss:$12 sps:$4 sm:$0xff]   ;;  %762 = vmatprep.mubr.bf16.mxu1 %v1223_v16  ;;  %v1514_v24 = vld [vmem:[%s2099_s17 + $0xc0] ss:$12 sps:$4 sm:$0xff]   ;;  %v1543_v25 = vld [vmem:[%s2099_s17 + $0x38] ss:$12 sps:$4 sm:$0xff]  }
  0x7d   : > { %1290 = vmatpush3.bf16.msra.mxu1 %v1539_v18  ;;  %v1544_v26 = vld [vmem:[%s2099_s17 + $0x110] ss:$12 sps:$4 sm:$0xff]   ;;  %v1517_v28 = vld [vmem:[%s2099_s17 + $0xd8] ss:$12 sps:$4 sm:$0xff]   ;;  %v1546_v30 = vld [vmem:[%s2099_s17 + $0x128] ss:$12 sps:$4 sm:$0xff]  }
  0x7e   : > { %694 = vmatpush1.bf16.msra.mxu0 %v1496_v5  ;;  %1291 = vmatprep.subr.bf16.mxu1 %v1540_v19  ;;  %v1515_v27 = vld [vmem:[%s2099_s17 + $0xdc] ss:$12 sps:$4 sm:$0xff]   ;;  %v1518_v31 = vld [vmem:[%s2099_s17 + $0xf4] ss:$12 sps:$4 sm:$0xff]   ;;  %v1521_v35 = vld [vmem:[%s2099_s17 + $0x10c] ss:$12 sps:$4 sm:$0xff]  }
  0x7f   : > { %695 = vmatprep.subr.bf16.mxu0 %v1497_v6  ;;  %v1545_v29 = vld [vmem:[%s2099_s17 + $0x50] ss:$12 sps:$4 sm:$0xff]   ;;  %v1547_v32 = vld [vmem:[%s2099_s17 + $0x68] ss:$12 sps:$4 sm:$0xff]   ;;  %v1548_v34 = vld [vmem:[%s2099_s17 + $0x140] ss:$12 sps:$4 sm:$0xff]  }
  0x80   : > { %v1520_v33 = vld [vmem:[%s2099_s17 + $0xf0] ss:$12 sps:$4 sm:$0xff]   ;;  %v1549_v36 = vld [vmem:[%s2099_s17 + $0x80] ss:$12 sps:$4 sm:$0xff]   ;;  %v1523_v37 = vld [vmem:[%s2099_s17 + $0x108] ss:$12 sps:$4 sm:$0xff]  }
  0x81   : > { %1292 = vmatpush3.bf16.msra.mxu1 %v1541_v21  ;;  %v1550_v38 = vld [vmem:[%s2099_s17 + $0x158] ss:$12 sps:$4 sm:$0xff]   ;;  %v1526_v41 = vld [vmem:[%s2099_s17 + $0x120] ss:$12 sps:$4 sm:$0xff]   ;;  %v1552_v42 = vld [vmem:[%s2099_s17 + $0x170] ss:$12 sps:$4 sm:$0xff]  }
  0x82   : > { %696 = vmatpush1.bf16.msra.mxu0 %v1499_v7  ;;  %1293 = vmatprep.subr.bf16.mxu1 %v1542_v22  ;;  %v1524_v39 = vld [vmem:[%s2099_s17 + $0x124] ss:$12 sps:$4 sm:$0xff]   ;;  %v1527_v43 = vld [vmem:[%s2099_s17 + $0x13c] ss:$12 sps:$4 sm:$0xff]   ;;  %v1530_v46 = vld [vmem:[%s2099_s17 + $0x154] ss:$12 sps:$4 sm:$0xff]  }
  0x83   : > { %697 = vmatprep.subr.bf16.mxu0 %v1500_v8  ;;  %v1551_v40 = vld [vmem:[%s2099_s17 + $0x98] ss:$12 sps:$4 sm:$0xff]   ;;  %v1553_v44 = vld [vmem:[%s2099_s17 + $0xb0] ss:$12 sps:$4 sm:$0xff]   ;;  %v1535_v50 = vld [vmem:[%s2099_s17 + $0x168] ss:$12 sps:$4 sm:$0xff]  }
  0x84   : > { %v1529_v45 = vld [vmem:[%s2099_s17 + $0x138] ss:$12 sps:$4 sm:$0xff]   ;;  %v1532_v47 = vld [vmem:[%s2099_s17 + $0x150] ss:$12 sps:$4 sm:$0xff]   ;;  %p335_p1 = scmp.lt.s32.totalorder %s334_s9, 5  ;;  %v417_v54 = vsub.s32 1, %v412_v53 }
  0x85   : > { %1294 = vmatpush3.bf16.msra.mxu1 %v1543_v25  ;;  %v1533_v49 = vld [vmem:[%s2099_s17 + $0x16c] ss:$12 sps:$4 sm:$0xff]   ;;  %v413_v56 = vsub.s32 0, %v412_v53  ;;  %vm780_vm1 = vcmask 523264   ;;  %s1813_s0 = smov 64   ;;  %vm846_vm2 = vcmask 1043456  }
  0x86   : > { %698 = vmatpush1.bf16.msra.mxu0 %v1502_v9  ;;  %1295 = vmatprep.subr.bf16.mxu1 %v1544_v26  ;;  %s2408_s9 = smov (!%p335_p1, %s334_s9), 5  ;;  %v421_v9 = vsub.s32 2, %v412_v53  ;;  %p339_p5 = scmp.lt.s32.totalorder %s1792_s28, 1  ;;  %vm830_vm3 = vcmask 64512   ;;  %vm828_vm4 = vcmask 60416  }
  0x87   : > { %699 = vmatprep.subr.bf16.mxu0 %v1503_v10  ;;  %s337_s30 = scalar_lea.vmem %s2337_s2, %s2408_s9  ;;  %s2183_s13 = sand.u32 1, %s1756_s19  }
  0x88   : > { %v409_v55 = vld [vmem:[%s337_s30] sm:$0x7]  ;;  %s340_s29 = scalar_select %p339_p5, %s1792_s28, 1 }
  0x89   : > { %1296 = vmatpush3.bf16.msra.mxu1 %v1545_v29  ;;  %v418_v59 = vrot.slane %v409_v55, %v417_v54  ;;  %v414_v63 = vrot.slane %v409_v55, %v413_v56  ;;  %v422_v10 = vrot.slane %v409_v55, %v421_v9  ;;  %s1220_s7 = sshll.u32 %s2183_s13, 3  ;;  %s1282_s21 = sshll.u32 %s1788_s27, 1 }
  0x8a   : > { %700 = vmatpush1.bf16.msra.mxu0 %v1505_v11  ;;  %1297 = vmatprep.subr.bf16.mxu1 %v1546_v30  ;;  %s341_s12 = scalar_lea.vmem %s2338_s3, %s340_s29  ;;  %s2189_s10 = scalar_lea.vmem [#allocation8], %s1220_s7 }
  0x8b   : > { %701 = vmatprep.subr.bf16.mxu0 %v1506_v12  ;;  %v1272_v14 = vld [vmem:[%s341_s12] ss:$0 sm:$0xff]  ;;  %s1048_s24 = sshll.u32 %s2189_s10, 4  ;;  %s1283_s18 = sshll.u32 %s1792_s28, 2  ;;  %s2214_s24 = int_to_ptr.vmem [resolvable:$true] %s1048_s24 }
  0x8c   : > { %s1045_s17 = sadd.s32 %s1283_s18, %s1282_s21  ;;  %s1018_s29 = scalar_lea.sflag [#allocation9], %s2183_s13 }
  0x8d   : > { %1298 = vmatpush3.bf16.msra.mxu1 %v1547_v32  ;;  %s1284_s9 = sshll.u32 %s1045_s17, 6  ;;  %s1622_s8 = scalar_lea.vmem %s2214_s24, 128 }
  0x8e   : > { %702 = vmatpush1.bf16.msra.mxu0 %v1508_v13  ;;  %1299 = vmatprep.subr.bf16.mxu1 %v1548_v34  ;;  %s2219_s30 = scalar_lea.hbm %s2340_s5, %s1284_s9  ;;  %p1623_p12 = scmp.ne.s32.totalorder %s2214_s24, %s1622_s8 }
  0x8f   : > { %703 = vmatprep.subr.bf16.mxu0 %v1509_v15  ;;  %p2378_p8 = scmp.ne.s32.totalorder %s2367_s15, 0  ;;  %s1814_s4 = smov [#allocation8]  }
  0x90   : > { %s1626_s12 = sshll.u32 %s1814_s4, 4  ;;  %s1627_s12 = int_to_ptr.vmem [resolvable:$false] %s1626_s12 }
  0x91   : > { %1300 = vmatpush3.bf16.msra.mxu1 %v1549_v36  ;;  %p1624_p0 = pnand %p1623_p12, %p2378_p8  ;;  %p1629_p9 = scmp.lt.s32.totalorder %s2214_s24, %s1627_s12 }
  0x92   : > { %704 = vmatpush1.bf16.msra.mxu0 %v1511_v20  ;;  %1301 = vmatprep.subr.bf16.mxu1 %v1550_v38 }
  0x93   : > { %705 = vmatprep.subr.bf16.mxu0 %v1512_v23  ;;  %p1625_p2 = pneg %p1624_p0 }
  0x95   : > { %1302 = vmatpush3.bf16.msra.mxu1 %v1551_v40 }
  0x96   : > { %706 = vmatpush1.bf16.msra.mxu0 %v1514_v24  ;;  %1303 = vmatprep.subr.bf16.mxu1 %v1552_v42 }
  0x97   : > { %707 = vmatprep.subr.bf16.mxu0 %v1515_v27 }
  0x99   : > { %1304 = vmatpush3.bf16.msra.mxu1 %v1553_v44 }
  0x9a   : > { %708 = vmatpush1.bf16.msra.mxu0 %v1517_v28  ;;  %1319 = vmatprep.subr.bf16.mxu1 %v1811_v51 }
  0x9b   : > { %709 = vmatprep.subr.bf16.mxu0 %v1518_v31 }
  0x9c   : > { %763 = vmatmul.mubr.bf16.vlgmr.msra.gmra.mrb[0].mxu1 %v1222_v48 }
  0x9d   : > { %1321 = vmatprep.mubr.msk.bf16.mxu1 %vm1812_vm0, %v1811_v51 }
  0x9e   : > { %710 = vmatpush1.bf16.msra.mxu0 %v1520_v33 }
  0x9f   : > { %711 = vmatprep.subr.bf16.mxu0 %v1521_v35 }
  0xa2   : > { %712 = vmatpush1.bf16.msra.mxu0 %v1523_v37 }
  0xa3   : > { %713 = vmatprep.subr.bf16.mxu0 %v1524_v39 }
  0xa6   : > { %714 = vmatpush1.bf16.msra.mxu0 %v1526_v41 }
  0xa7   : > { %715 = vmatprep.subr.bf16.mxu0 %v1527_v43 }
  0xaa   : > { %716 = vmatpush1.bf16.msra.mxu0 %v1529_v45 }
  0xab   : > { %717 = vmatprep.subr.bf16.mxu0 %v1530_v46 }
  0xae   : > { %718 = vmatpush1.bf16.msra.mxu0 %v1532_v47 }
  0xaf   : > { %719 = vmatprep.subr.bf16.mxu0 %v1533_v49 }
  0xb2   : > { %720 = vmatpush1.bf16.msra.mxu0 %v1535_v50 }
  0xb5   : > { %722 = vmatmul.mubr.bf16.vlgmr.msra.gmra.mrb[0].mxu0 %v1222_v48 }
 0x16f   : > { %v1305_v57 = vpop.f32.mrb[0].mxu1 }
 0x170   : > { %v1306_v58 = vpop.f32.mrb[1].mxu1 }
 0x171   : > { %v1307_v60 = vadd.f32 %v1306_v58, %v1305_v57  ;;  %v1308_v61 = vpop.f32.mrb[2].mxu1 }
 0x172   : > { %v1309_v62 = vpop.f32.mrb[3].mxu1 }
 0x173   : > { %v765_v11 = vadd.f32 %v1307_v60, %v422_v10 }
 0x175   : > { %v772_v12 = vpack.c.bf16 %v765_v11, %v765_v11 }
 0x177   : > { %v848_v13 = vsel %vm846_vm2, %v772_v12, 0 }
 0x188   : > { %v723_v0 = vpop.f32.mrb[0].mxu0 }
 0x189   : > { %v725_v1 = vpop.f32.mrb[1].mxu0  ;;  %v724_v5 = vadd.f32 %v723_v0, %v414_v63 }
 0x18a   : > { %v726_v2 = vadd.f32 %v725_v1, %v418_v59  ;;  %v727_v3 = vpop.f32.mrb[2].mxu0 }
 0x18b   : > { %v728_v4 = vpop.f32.mrb[3].mxu0  ;;  %v770_v8 = vpack.c.bf16 %v724_v5, %v724_v5 }
 0x18c   : > { %v771_v6 = vpack.c.bf16 %v726_v2, %v726_v2 }
 0x18e   : > { %v785_v7 = vsel %vm780_vm1, %v771_v6, 0  ;;  %894 = vrot.lane.b32.xlu1 %v771_v6, %s1813_s0 }
 0x18f   : > { %1320 = vmatpush3.bf16.xpose.msra.mxu1 %v785_v7 }
 0x190   : > { %1325 = vmatprep.subr.bf16.mxu1 %v1811_v51 }
 0x192   : > { %891 = vrot.lane.b32.xlu1 %v770_v8, %s1813_s0 }
 0x196   : > { %1322 = vmatmul.mubr.msk.bf16.vlgmr.msra.gmra.mrb[4].mxu1 %vm780_vm1, %v770_v8 }
 0x197   : > { %1327 = vmatprep.mubr.msk.bf16.mxu1 %vm1812_vm0, %v1811_v51  ;;  %1326 = vmatpush3.bf16.msra.mxu1 %v848_v13 }
 0x198   : > { %1331 = vmatprep.subr.bf16.mxu1 %v1811_v51 }
 0x200   : > { %v895_v30 = vpop.permute.xlu1 %894 }
 0x201   : > { %v900_v32 = vsel %vm780_vm1, %v895_v30, 0 }
 0x204   : > { %v892_v33 = vpop.permute.xlu1 %891 }
 0x269   : > { %v821_v15 = vpop.f32.mrb[4].mxu1 }
 0x26a   : > { %v822_v16 = vadd.f32 %v1272_v14, %v821_v15  ;;  %v1323_v17 = vpop.f32.mrb[5].mxu1 }
 0x26b   : > { %v824_v18 = vpop.f32.mrb[6].mxu1 }
 0x26c   : > { %v827_v19 = vpack.c.bf16 %v822_v16, %v822_v16  ;;  %v1324_v20 = vpop.f32.mrb[7].mxu1  ;;  %v831_v21 = vsel %vm830_vm3, %v822_v16, -inf }
 0x26d   : > { %832 = vmax.xlane.f32.xlu0 %v831_v21 }
 0x26e   : > { %829 = vst.msk [vmem:[%s2189_s10] sm:$0xf] %vm828_vm4, %v827_v19 }
 0x2fa   : > { %v833_v22 = vpop.xlane.xlu0 %832 }
 0x2fb   : > { %v834_v23 = vsub.f32 %v822_v16, %v833_v22 }
 0x2fd   : > { %v835_v24 = vmul.f32 1.442695, %v834_v23 }
 0x2ff   : > { %1554 = vpow2.f32 %v835_v24 }
 0x309   : > { %v1555_v25 = vpop.eup %1554 }
 0x30a   : > { %v837_v26 = vsel %vm830_vm3, %v1555_v25, 0.0 }
 0x30b   : > { %838 = vadd.xlane.f32.xlu0 %v837_v26 }
 0x398   : > { %v839_v27 = vpop.xlane.xlu0 %838 }
 0x399   : > { %1556 = vrcp.f32 %v839_v27 }
 0x3a3   : > { %v1557_v28 = vpop.eup %1556 }
 0x3a4   : > { %v841_v29 = vmul.f32 %v1557_v28, %v1555_v25 }
 0x3a6   : > { %v842_v31 = vpack.c.bf16 %v841_v29, %v841_v29 }
 0x3a8   : > { %1328 = vmatmul.mubr.msk.bf16.vlgmr.msra.gmra.mrb[8].mxu1 %vm830_vm3, %v842_v31 }
 0x3a9   : > { %1332 = vmatpush3.bf16.xpose.msra.mxu1 %v900_v32  ;;  %1333 = vmatprep.mubr.msk.bf16.mxu1 %vm1812_vm0, %v1811_v51 }
 0x3aa   : > { %1337 = vmatprep.subr.bf16.mxu1 %v1811_v51 }
 0x3b0   : > { %1334 = vmatmul.mubr.msk.bf16.vlgmr.msra.gmra.mrb[12].mxu1 %vm780_vm1, %v892_v33 }
 0x3b1   : > { %1339 = vmatprep.mubr.msk.bf16.mxu1 %vm1812_vm0, %v1811_v51 }
 0x47b   : > { %v2202_v34 = vpop.f32.mrb[8].mxu1 }
 0x47c   : > { %v1329_v35 = vpop.f32.mrb[9].mxu1 }
 0x47d   : > { %v887_v36 = vpop.f32.mrb[10].mxu1 }
 0x47e   : > { %v1330_v37 = vpop.f32.mrb[11].mxu1 }
 0x483   : > { %v936_v38 = vpop.f32.mrb[12].mxu1 }
 0x484   : > { %v937_v39 = vadd.f32 %v1272_v14, %v936_v38  ;;  %v1335_v40 = vpop.f32.mrb[13].mxu1 }
 0x485   : > { %v939_v41 = vpop.f32.mrb[14].mxu1 }
 0x486   : > { %v942_v42 = vpack.c.bf16 %v937_v39, %v937_v39  ;;  %v1336_v43 = vpop.f32.mrb[15].mxu1  ;;  %v945_v44 = vsel %vm830_vm3, %v937_v39, -inf }
 0x487   : > { %946 = vmax.xlane.f32.xlu0 %v945_v44 }
 0x488   : > { %1276 = vst.msk [vmem:[%s2189_s10 + $0x4] sm:$0xf] %vm828_vm4, %v942_v42  ;;  %s1628_s10 = scalar_lea.vmem %s1627_s12, 256 }
 0x489   : > { %p1630_p7 = scmp.lt.s32.totalorder %s1628_s10, %s1622_s8 }
 0x48b   : > { %p1631_p10 = por %p1630_p7, %p1629_p9 }
 0x48d   : > { %p1632_p6 = pnand %p1631_p10, %p1625_p2 }
 0x49d   : > { %958 = vrot.lane.b32.xlu0 %v772_v12, %s1813_s0 }
 0x514   : > { %v947_v45 = vpop.xlane.xlu0 %946 }
 0x515   : > { %v948_v46 = vsub.f32 %v937_v39, %v947_v45 }
 0x517   : > { %v949_v47 = vmul.f32 1.442695, %v948_v46 }
 0x518   : > { %v959_v48 = vpop.permute.xlu0 %958 }
 0x519   : > { %1558 = vpow2.f32 %v949_v47  ;;  %v964_v49 = vsel %vm846_vm2, %v959_v48, 0 }
 0x51a   : > { %1338 = vmatpush3.bf16.msra.mxu1 %v964_v49 }
 0x523   : > { %v1559_v50 = vpop.eup %1558 }
 0x524   : > { %v951_v51 = vsel %vm830_vm3, %v1559_v50, 0.0 }
 0x525   : > { %952 = vadd.xlane.f32.xlu1 %v951_v51 }
 0x5b2   : > { %v953_v52 = vpop.xlane.xlu1 %952 }
 0x5b3   : > { %1560 = vrcp.f32 %v953_v52 }
 0x5bd   : > { %v1561_v53 = vpop.eup %1560 }
 0x5be   : > { %v955_v54 = vmul.f32 %v1561_v53, %v1559_v50 }
 0x5c0   : > { %v956_v55 = vpack.c.bf16 %v955_v54, %v955_v54 }
 0x5c2   : > { %1340 = vmatmul.mubr.msk.bf16.vlgmr.msra.gmra.mrb[16].mxu1 %vm830_vm3, %v956_v55 }
 0x5c3   : > { %1635 = shalt.err (!%p1632_p6)
}
 0x5c4   : > { %s1636_s21 = scalar_lea.hbm %s2219_s30, 128  ;;  %s1640_s9 = scalar_lea.hbm %s2340_s5, 512 }
 0x5c5   : > { %p1637_p4 = scmp.ne.s32.totalorder %s2219_s30, %s1636_s21  ;;  %p1641_p11 = scmp.lt.u32.totalorder %s2219_s30, %s2340_s5 }
 0x5c6   : > { %p1642_p1 = scmp.lt.u32.totalorder %s1640_s9, %s1636_s21  ;;  %p1644_p12 = scmp.lt.u32.totalorder %s1636_s21, %s2219_s30 }
 0x5c7   : > { %p1638_p3 = pnand %p1637_p4, %p2378_p8 }
 0x5c8   : > { %p1643_p5 = por %p1642_p1, %p1641_p11 }
 0x5c9   : > { %p1639_p13 = pneg %p1638_p3 }
 0x5ca   : > { %p1645_p0 = por %p1644_p12, %p1643_p5 }
 0x5cc   : > { %p1646_p2 = pnand %p1645_p0, %p1639_p13 }
 0x5ce   : > { %1649 = shalt.err (!%p1646_p2)
}
 0x5cf   : > { %s1815_s8 = smov 4   ;;  %s1280_s4 = sshll.u32 %s1792_s28, 1 }
 0x5d0   : > { %1350 = dma.vmem_to_hbm [thread:$0]  (%p2378_p8), %s2214_s24, 128, %s2219_s30, %s1018_s29, %s1813_s0, %s1813_s0, %s1815_s8  }
 0x5d1   : > { %s1029_s12 = sadd.s32 %s1788_s27, %s1280_s4  ;;  %s325_s21 = scalar_lea.vmem [#allocation7], %s1220_s7 }
 0x5d2   : > { %s1281_s10 = sshll.u32 %s1029_s12, 7  ;;  %s1033_s18 = sshll.u32 %s325_s21, 4  ;;  %s2257_s18 = int_to_ptr.vmem [resolvable:$true] %s1033_s18 }
 0x5d3   : > { %s2379_s16 = sld [smem:[#allocation23_spill]]  ;;  %s1013_s27 = scalar_lea.sflag [#allocation4], %s2183_s13 }
 0x5d4   : > { %s1650_s28 = scalar_lea.vmem %s2257_s18, 128 }
 0x5d5   : > { %p1651_p9 = scmp.ne.s32.totalorder %s2257_s18, %s1650_s28 }
 0x5d7   : > { %p1652_p7 = pnand %p1651_p9, %p2378_p8 }
 0x5d9   : > { %s2255_s11 = scalar_lea.hbm %s2379_s16, %s1281_s10  ;;  %p1653_p10 = pneg %p1652_p7 }
 0x695   : > { %v1000_v56 = vpop.f32.mrb[16].mxu1 }
 0x696   : > { %1007 = vrot.lane.b32.xlu0 %v1000_v56, %s1813_s0  ;;  %v1341_v57 = vpop.f32.mrb[17].mxu1  ;;  %s1816_s0 = smov [#allocation7]  }
 0x697   : > { %v1003_v58 = vpop.f32.mrb[18].mxu1  ;;  %s1654_s7 = sshll.u32 %s1816_s0, 4  ;;  %s1655_s7 = int_to_ptr.vmem [resolvable:$false] %s1654_s7 }
 0x698   : > { %v1342_v59 = vpop.f32.mrb[19].mxu1  ;;  %s1656_s24 = scalar_lea.vmem %s1655_s7, 256  ;;  %p1657_p6 = scmp.lt.s32.totalorder %s2257_s18, %s1655_s7 }
 0x699   : > { %p1658_p4 = scmp.lt.s32.totalorder %s1656_s24, %s1650_s28 }
 0x69b   : > { %p1659_p3 = por %p1658_p4, %p1657_p6 }
 0x69d   : > { %p1660_p13 = pnand %p1659_p3, %p1653_p10 }
 0x708   : > { %v1008_v60 = vpop.permute.xlu0 %1007 }
 0x709   : > { %v1010_v61 = vsel %vm780_vm1, %v2202_v34, %v1008_v60 }
 0x70a   : > { %1011 = vst [vmem:[%s325_s21] sm:$0xff] %v1010_v61 }
 0x70b   : > { %1663 = shalt.err (!%p1660_p13)
}
 0x70c   : > { %s1664_s13 = scalar_lea.hbm %s2255_s11, 128  ;;  %s1668_s8 = scalar_lea.hbm %s2379_s16, 512 }
 0x70d   : > { %p1665_p11 = scmp.ne.s32.totalorder %s2255_s11, %s1664_s13  ;;  %p1669_p12 = scmp.lt.u32.totalorder %s2255_s11, %s2379_s16 }
 0x70e   : > { %p1670_p0 = scmp.lt.u32.totalorder %s1668_s8, %s1664_s13  ;;  %p1672_p9 = scmp.lt.u32.totalorder %s1664_s13, %s2255_s11 }
 0x70f   : > { %p1666_p1 = pnand %p1665_p11, %p2378_p8 }
 0x710   : > { %p1671_p2 = por %p1670_p0, %p1669_p12 }
 0x711   : > { %p1667_p5 = pneg %p1666_p1 }
 0x712   : > { %p1673_p7 = por %p1672_p9, %p1671_p2 }
 0x714   : > { %p1674_p10 = pnand %p1673_p7, %p1667_p5 }
 0x716   : > { %1677 = shalt.err (!%p1674_p10)
}
 0x717   : > { %1349 = dma.vmem_to_hbm [thread:$0]  (%p2378_p8), %s2257_s18, 128, %s2255_s11, %s1013_s27  }
 0x718 PF: > { %s2380_s10 = sld [smem:[#allocation14_spill]]  ;;  %p1368_p6 = scmp.ge.s32.totalorder %s1804_s6, 2 }
 0x719   : > { %p2381_p4 = scmp.ne.s32.totalorder %s2369_s14, 0 }
 0x71b   : > { %p1361_p3 = pnand %p1368_p6, %p2381_p4 }
 0x71e   : > { %s1063_s21 = sand.u32 1, %s2380_s10  }
 0x71f   : > { %s1064_s17 = scalar_lea.sflag [#allocation4], %s1063_s21 }
 0x720   : > { %1743 = dma.done.wait (!%p1361_p3), %s1064_s17, 128  }
 0x721   : > { %1745 = vsyncadd (!%p1361_p3), %s1064_s17, 4294967168  ;;  %s1073_s9 = scalar_lea.sflag [#allocation9], %s1063_s21 }
 0x722   : > { %1747 = dma.done.wait (!%p1361_p3), %s1073_s9, 128  }
 0x723   : > { %1749 = vsyncadd (!%p1361_p3), %s1073_s9, 4294967168  ;;  %s28_s6 = sadd.s32 1, %s1804_s6   ;;  %s2383_s11 = sld [smem:[#allocation21_spill]] }
 0x724   : > { %p2288_p13 = scmp.ge.s32.totalorder %s28_s6, 6   ;;  %s2384_s27 = sld [smem:[#allocation19_spill]] }
 0x725   : > { %s2385_s14 = sld [smem:[#allocation20_spill]]  ;;  %s2386_s28 = sld [smem:[#allocation15_spill]] }
 0x726   : > { %s2387_s0 = sld [smem:[#allocation16_spill]]  ;;  %s2388_s29 = sld [smem:[#allocation17_spill]] }
 0x727   : > { %s2389_s30 = sld [smem:[#allocation18_spill]]  ;;  %s2390_s18 = smov %s1756_s19 }
 0x728   : > { %s2391_s19 = smov %s1760_s20  ;;  %s2393_s21 = smov %s1768_s22 }
 0x729   : > { %s2392_s20 = smov %s2383_s11  ;;  %s2394_s22 = smov %s1772_s23 }
 0x72a   : > { %s2395_s23 = smov %s2384_s27  ;;  %s2396_s24 = smov %s1780_s25 }
 0x72b   : > { %s2397_s25 = smov %s1784_s26  ;;  %s2398_s26 = smov %s2385_s14 }
 0x72c   : > { %s2399_s27 = smov %s2386_s28  ;;  %s2400_s28 = smov %s2387_s0 }
 0x72d   :  { %27 = sbr.rel (!%p2288_p13) target bundleno = 17 (0x11), region = 118 }
 0x734   :  { %1078 = vsyncpa [#allocation3], 1 }
 0x735   :  { %1080 = vsyncpa [#allocation3 + $0x1], 1 }
 0x736   :  { %1081 = vsyncpa [#allocation6], 1 }
 0x737   :  { %1083 = vsyncpa [#allocation6 + $0x1], 1 }
 0x738   :  { %1084 = vsyncpa [#allocation4], 1 }
 0x739   :  { %1086 = vsyncpa [#allocation4 + $0x1], 1 }
 0x73a   :  { %1087 = vsyncpa [#allocation9], 1 }
 0x73b   :  { %1089 = vsyncpa [#allocation9 + $0x1], 1 }

</bundles_post_ra>
